<compile_context>
chip_gen: v7x
topology: tpu7x:2x2x1
jax: 0.10.0
libtpu: 0.0.40
codegen_flags: <defaults>
</compile_context>

<pallas_src>
import jax
import jax.numpy as jnp
from jax.experimental import pallas as pl
from jax.experimental.pallas import tpu as pltpu

HIDDEN = 128
T_CHUNK = 8        # timesteps per grid step (amortizes ~0.35us grid-step overhead);
                   # raise for long sequences (budget VMEM: chunk fits trivially here).
ROW_PAD = 8        # f32 sublane minimum: recurrent state kept as 8 identical rows
LANE = 128


def _round_up(n, m):
    return (n + m - 1) // m * m


# ---------------- Kernel 1: batched input projection (off the critical path) -------------
def proj_kernel(x_ref, wx_ref, b_ref, out_ref):
    out_ref[...] = (jnp.dot(x_ref[...], wx_ref[...],
                            preferred_element_type=jnp.float32)
                    + b_ref[...])


def input_projection(x_last, wx, b):
    S_pad, In = x_last.shape
    return pl.pallas_call(
        proj_kernel,
        out_shape=jax.ShapeDtypeStruct((S_pad, 4 * HIDDEN), jnp.float32),
        grid_spec=pltpu.PrefetchScalarGridSpec(
            num_scalar_prefetch=0,
            grid=(S_pad // T_CHUNK,),
            in_specs=[
                pl.BlockSpec((T_CHUNK, In), lambda i: (i, 0)),
                pl.BlockSpec((In, 4 * HIDDEN), lambda i: (0, 0)),
                pl.BlockSpec((1, 4 * HIDDEN), lambda i: (0, 0)),
            ],
            out_specs=pl.BlockSpec((T_CHUNK, 4 * HIDDEN), lambda i: (i, 0)),
        ),
        compiler_params=pltpu.CompilerParams(
            dimension_semantics=("parallel",)),   # independent chunks -> megacore on v7x
    )(x_last, wx, b)


# --------- Kernel 2: LSTM recurrence (one matmul/step) + fused, lane-dense FC epilogue ----
def lstm_fc_kernel(xproj_ref, wh_ref, fcw_ref, fcb_ref, out_ref,
                   h_scr, c_scr, hrow_scr):
    c_idx = pl.program_id(0)

    @pl.when(c_idx == 0)
    def _():
        h_scr[...] = jnp.zeros_like(h_scr)
        c_scr[...] = jnp.zeros_like(c_scr)

    # Hoist chunk/weight loads out of the unrolled time loop (bias is already folded
    # into xproj, so there is no per-step bias broadcast at all).
    wh = wh_ref[...]          # (H, 4H): bf16 on v6e/v7x, f32 on v5e
    xproj = xproj_ref[...]    # (T_CHUNK, 4H) f32

    h = h_scr[...]            # (8, H) f32 — 8 identical rows (sublane padding)
    c = c_scr[...]            # (8, H) f32
    for t in range(T_CHUNK):  # short, static -> fully unrolled straight-line code
        hw = jnp.dot(h.astype(wh.dtype), wh,
                     preferred_element_type=jnp.float32)          # (8, 4H), f32 accumulate
        gates = hw + xproj[t:t + 1, :]                            # (1,4H) -> (8,4H) bcast
        i_g = jax.nn.sigmoid(gates[:, 0 * HIDDEN:1 * HIDDEN])
        f_g = jax.nn.sigmoid(gates[:, 1 * HIDDEN:2 * HIDDEN])
        g_g = jnp.tanh(gates[:, 2 * HIDDEN:3 * HIDDEN])
        o_g = jax.nn.sigmoid(gates[:, 3 * HIDDEN:4 * HIDDEN])
        c = f_g * c + i_g * g_g
        h = o_g * jnp.tanh(c)
        hrow_scr[pl.ds(t, 1), :] = h[0:1, :]      # rows identical; keep row 0 per timestep

    h_scr[...] = h            # carry state to next chunk
    c_scr[...] = c

    # Fused FC: one lane-dense (T_CHUNK, H) x (H, 128) matmul per chunk; full 128-wide store.
    out_ref[...] = (jnp.dot(hrow_scr[...], fcw_ref[...],
                            preferred_element_type=jnp.float32)
                    + fcb_ref[...])


def lstm_fc_forward(xproj, wh, fc_w_pad, fc_b_pad):
    S_pad = xproj.shape[0]
    n_pad = fc_w_pad.shape[1]
    return pl.pallas_call(
        lstm_fc_kernel,
        out_shape=jax.ShapeDtypeStruct((S_pad, n_pad), jnp.float32),
        grid_spec=pltpu.PrefetchScalarGridSpec(
            num_scalar_prefetch=0,
            grid=(S_pad // T_CHUNK,),
            in_specs=[
                pl.BlockSpec((T_CHUNK, 4 * HIDDEN), lambda c: (c, 0)),
                pl.BlockSpec((HIDDEN, 4 * HIDDEN), lambda c: (0, 0)),
                pl.BlockSpec((HIDDEN, n_pad), lambda c: (0, 0)),
                pl.BlockSpec((1, n_pad), lambda c: (0, 0)),
            ],
            out_specs=pl.BlockSpec((T_CHUNK, n_pad), lambda c: (c, 0)),
            scratch_shapes=[
                pltpu.VMEM((ROW_PAD, HIDDEN), jnp.float32),   # h state
                pltpu.VMEM((ROW_PAD, HIDDEN), jnp.float32),   # c state
                pltpu.VMEM((T_CHUNK, HIDDEN), jnp.float32),   # h history for FC epilogue
            ],
        ),
        compiler_params=pltpu.CompilerParams(
            dimension_semantics=("arbitrary",)),   # sequential recurrence over chunks
    )(xproj, wh, fc_w_pad, fc_b_pad)


# ---------------- Model wrapper ----------------
def lmu_model_forward(x, params, *, recurrent_dtype=jnp.float32):
    S, B, In = x.shape
    output_size = params["fc_w"].shape[1]

    # Only the last batch row feeds fc(out[:, -1, :]); batch rows are independent, so this
    # is bit-identical to running the full batch and slicing.
    x_last = x[:, -1, :]                                   # (S, In)

    S_pad = _round_up(S, T_CHUNK)
    if S_pad != S:
        x_last = jnp.pad(x_last, ((0, S_pad - S), (0, 0)))

    xproj = input_projection(x_last, params["wx"], params["b"])         # (S_pad, 4H)

    # Pad FC output to a full 128-lane width (unmasked stores); slice after.
    n_pad = _round_up(max(output_size, LANE), LANE)
    fc_w_pad = jnp.pad(params["fc_w"], ((0, 0), (0, n_pad - output_size)))
    fc_b_pad = jnp.pad(params["fc_b"], ((0, 0), (0, n_pad - output_size)))

    out_pad = lstm_fc_forward(xproj, params["wh"].astype(recurrent_dtype),
                              fc_w_pad, fc_b_pad)                        # (S_pad, n_pad)
    return out_pad[:S, :output_size]


def init_params(key, input_size, output_size):
    k = 1.0 / jnp.sqrt(jnp.float32(HIDDEN))
    keys = jax.random.split(key, 6)
    # PyTorch LSTM weights are (4H, In)/(4H, H); store transposed for x @ W layouts.
    w_ih = jax.random.uniform(keys[0], (4 * HIDDEN, input_size), jnp.float32, -k, k)
    w_hh = jax.random.uniform(keys[1], (4 * HIDDEN, HIDDEN), jnp.float32, -k, k)
    b_ih = jax.random.uniform(keys[2], (4 * HIDDEN,), jnp.float32, -k, k)
    b_hh = jax.random.uniform(keys[3], (4 * HIDDEN,), jnp.float32, -k, k)
    fc_w = jax.random.uniform(keys[4], (output_size, HIDDEN), jnp.float32, -k, k)
    fc_b = jax.random.uniform(keys[5], (output_size,), jnp.float32, -k, k)
    return {
        "wx": w_ih.T,                                  # (In, 4H)
        "wh": w_hh.T,                                  # (H, 4H)
        "b": (b_ih + b_hh).reshape(1, 4 * HIDDEN),     # (1, 4H) combined bias
        "fc_w": fc_w.T,                                # (H, out)
        "fc_b": fc_b.reshape(1, output_size),          # (1, out)
    }


# Pure-JAX reference (full batch), for correctness checking.
def reference_forward(x, params):
    S, B, _ = x.shape

    def step(carry, x_t):
        h, c = carry
        gates = x_t @ params["wx"] + h @ params["wh"] + params["b"]
        i = jax.nn.sigmoid(gates[:, 0 * HIDDEN:1 * HIDDEN])
        f = jax.nn.sigmoid(gates[:, 1 * HIDDEN:2 * HIDDEN])
        g = jnp.tanh(gates[:, 2 * HIDDEN:3 * HIDDEN])
        o = jax.nn.sigmoid(gates[:, 3 * HIDDEN:4 * HIDDEN])
        c = f * c + i * g
        h = o * jnp.tanh(c)
        return (h, c), h

    init = (jnp.zeros((B, HIDDEN), jnp.float32), jnp.zeros((B, HIDDEN), jnp.float32))
    _, hs = jax.lax.scan(step, init, x)                # (S, B, H)
    return hs[:, -1, :] @ params["fc_w"] + params["fc_b"]


if __name__ == "__main__":
    seq_len, batch, input_size, output_size = 8, 2, 16, 10

    key = jax.random.PRNGKey(0)
    kx, kp = jax.random.split(key)
    x = jax.random.normal(kx, (seq_len, batch, input_size), jnp.float32)
    params = init_params(kp, input_size, output_size)

    ref = reference_forward(x, params)

    # f32 recurrent matmul (v5e recommendation): strict check against the reference.
    out_f32 = lmu_model_forward(x, params, recurrent_dtype=jnp.float32)
    jax.block_until_ready(out_f32)
    assert out_f32.shape == (seq_len, output_size)
    assert jnp.allclose(out_f32, ref, atol=1e-4, rtol=1e-4)

    # bf16 MXU operands for the in-loop h @ Wh (v6e/v7x recommendation); h/c state and
    # accumulation stay f32, so only small recurrent drift — relaxed tolerance.
    out_bf16 = lmu_model_forward(x, params, recurrent_dtype=jnp.bfloat16)
    jax.block_until_ready(out_bf16)
    assert out_bf16.shape == (seq_len, output_size)
    assert jnp.allclose(out_bf16, ref, atol=3e-2, rtol=3e-2)

    print("KERNEL_OK")
</pallas_src>

<mosaic_0001>
module attributes {stable_mosaic.version = 11 : i64} {
  func.func @proj_kernel(%arg0: i32, %arg1: memref<8x16xf32, #tpu.memory_space<vmem>>, %arg2: memref<16x512xf32, #tpu.memory_space<vmem>>, %arg3: memref<1x512xf32, #tpu.memory_space<vmem>>, %arg4: memref<8x512xf32, #tpu.memory_space<vmem>>) attributes {dimension_semantics = [#tpu.dimension_semantics<parallel>], iteration_bounds = array<i64: 1>, scalar_prefetch = 0 : i64, scratch_operands = 0 : i64, tpu.core_type = #tpu.core_type<tc>, window_params = [{transform_indices = @transform_0, window_bounds = array<i64: 8, 16>}, {pipeline_mode = #tpu.pipeline_mode<synchronous>, transform_indices = @transform_1, window_bounds = array<i64: 16, 512>}, {pipeline_mode = #tpu.pipeline_mode<synchronous>, transform_indices = @transform_2, window_bounds = array<i64: 1, 512>}, {transform_indices = @transform_3, window_bounds = array<i64: 8, 512>}]} {
    %c0 = arith.constant 0 : index
    %c0_0 = arith.constant 0 : index
    %0 = vector.load %arg1[%c0, %c0_0] : memref<8x16xf32, #tpu.memory_space<vmem>>, vector<8x16xf32>
    %c0_1 = arith.constant 0 : index
    %c0_2 = arith.constant 0 : index
    %1 = vector.load %arg2[%c0_1, %c0_2] : memref<16x512xf32, #tpu.memory_space<vmem>>, vector<16x512xf32>
    %cst = arith.constant dense<0.000000e+00> : vector<8x512xf32>
    %2 = tpu.matmul %0, %1, %cst {dimension_numbers = #tpu.dot_dimension_numbers<[1], [0], [0], [1], [0, 0, 1, 1], [], []>} : vector<8x16xf32>, vector<16x512xf32>, vector<8x512xf32> -> vector<8x512xf32>
    %c0_3 = arith.constant 0 : index
    %c0_4 = arith.constant 0 : index
    %3 = vector.load %arg3[%c0_3, %c0_4] : memref<1x512xf32, #tpu.memory_space<vmem>>, vector<1x512xf32>
    %4 = vector.broadcast %3 : vector<1x512xf32> to vector<8x512xf32>
    %5 = arith.addf %2, %4 : vector<8x512xf32>
    %c0_5 = arith.constant 0 : index
    %c0_6 = arith.constant 0 : index
    %6 = vector.load %arg4[%c0_5, %c0_6] : memref<8x512xf32, #tpu.memory_space<vmem>>, vector<8x512xf32>
    tpu.vector_store %arg4[%c0_5, %c0_6], %5 {strides = array<i32>} : memref<8x512xf32, #tpu.memory_space<vmem>>, vector<8x512xf32>,
    return
  }
  func.func @transform_0(%arg0: i32) -> (i32, i32) {
    %c0_i32 = arith.constant 0 : i32
    %c0_i32_0 = arith.constant 0 : i32
    return %arg0, %c0_i32 : i32, i32
  }
  func.func @transform_1(%arg0: i32) -> (i32, i32) {
    %c0_i32 = arith.constant 0 : i32
    %c0_i32_0 = arith.constant 0 : i32
    %c0_i32_1 = arith.constant 0 : i32
    return %c0_i32, %c0_i32_0 : i32, i32
  }
  func.func @transform_2(%arg0: i32) -> (i32, i32) {
    %c0_i32 = arith.constant 0 : i32
    %c0_i32_0 = arith.constant 0 : i32
    %c0_i32_1 = arith.constant 0 : i32
    return %c0_i32, %c0_i32_0 : i32, i32
  }
  func.func @transform_3(%arg0: i32) -> (i32, i32) {
    %c0_i32 = arith.constant 0 : i32
    %c0_i32_0 = arith.constant 0 : i32
    return %arg0, %c0_i32 : i32, i32
  }
}

</mosaic_0001>

<bundles_post_ra>
// kernel: tpu_custom_call.1
= control target key start
LH: loop header
LB: loop body
LE: loop exit
PB: predicated region body
PF: predicated region fallthrough
CT: control target
= control target key end

     0   :  { %8 = vsyncpa [#allocation3], 0  ;;  %s398_s0 = inlined_call_operand.hbm [shape: f32[8,16], index: 0, kind: input, shape index: {}]   ;;  %s399_s1 = inlined_call_operand.hbm [shape: f32[16,512], index: 1, kind: input, shape index: {}]   ;;  %s400_s2 = inlined_call_operand.vmem [shape: f32[1,512], index: 2, kind: input, shape index: {}]   ;;  %s401_s3 = inlined_call_operand.hbm [shape: f32[8,512], index: 3, kind: output, shape index: {}]  }
   0x1   :  { %9 = vsyncpa [#allocation6], 0 }
   0x2   :  { %10 = vsyncpa [#allocation4], 0  ;;  %s326_s12 = smov [#allocation2]   ;;  %s327_s14 = smov [#allocation5]  }
   0x3   :  { %s17_s13 = sshll.u32 %s326_s12, 4  ;;  %s26_s15 = sshll.u32 %s327_s14, 4  ;;  %s18_s13 = int_to_ptr.vmem [resolvable:$true] %s17_s13  ;;  %s352_s15 = int_to_ptr.vmem [resolvable:$true] %s26_s15 }
   0x4   :  { %s254_s18 = scalar_lea.hbm %s398_s0, 128 }
   0x5   :  { %p255_p0 = scmp.ne.s32.totalorder %s398_s0, %s254_s18  ;;  %p258_p1 = scmp.lt.u32.totalorder %s254_s18, %s398_s0 }
   0x7   :  { %p260_p2 = pnand %p258_p1, %p255_p0 }
   0x9   :  { %263 = shalt.err (!%p260_p2)
}
   0xa   :  { %s264_s23 = scalar_lea.vmem %s18_s13, 128  ;;  %p269_p4 = scmp.lt.s32.totalorder %s18_s13, %s18_s13 }
   0xb   :  { %p265_p3 = scmp.ne.s32.totalorder %s18_s13, %s264_s23  ;;  %p270_p5 = scmp.lt.s32.totalorder %s264_s23, %s264_s23 }
   0xd   :  { %p271_p6 = por %p270_p5, %p269_p4 }
   0xf   :  { %p272_p7 = pnand %p271_p6, %p265_p3 }
  0x11   :  { %275 = shalt.err (!%p272_p7)
}
  0x12   :  { %20 = dma.hbm_to_vmem [thread:$0]  %s398_s0, 128, %s18_s13, [#allocation3]  }
  0x13   :  { %s276_s28 = scalar_lea.hbm %s399_s1, 1024 }
  0x14   :  { %p277_p8 = scmp.ne.s32.totalorder %s399_s1, %s276_s28  ;;  %p280_p9 = scmp.lt.u32.totalorder %s276_s28, %s399_s1 }
  0x16   :  { %p282_p10 = pnand %p280_p9, %p277_p8 }
  0x18   :  { %285 = shalt.err (!%p282_p10)
}
  0x19   :  { %s286_s6 = scalar_lea.vmem %s352_s15, 1024  ;;  %p291_p12 = scmp.lt.s32.totalorder %s352_s15, %s352_s15 }
  0x1a   :  { %p287_p11 = scmp.ne.s32.totalorder %s352_s15, %s286_s6  ;;  %p292_p13 = scmp.lt.s32.totalorder %s286_s6, %s286_s6 }
  0x1c   :  { %p293_p0 = por %p292_p13, %p291_p12 }
  0x1e   :  { %p294_p1 = pnand %p293_p0, %p287_p11 }
  0x20   :  { %297 = shalt.err (!%p294_p1)
}
  0x21   :  { %s328_s0 = smov 512   ;;  %s329_s7 = smov 32  }
  0x22   :  { %32 = dma.hbm_to_vmem [thread:$0]  %s399_s1, 1024, %s352_s15, [#allocation6], %s328_s0, %s328_s0, %s329_s7  }
  0x23   :  { %320 = dma.done.wait [#allocation3], 128  }
  0x24   :  { %321 = vsyncadd [#allocation3], 4294967168 }
  0x25   :  { %322 = dma.done.wait [#allocation6], 1024  }
  0x26   :  { %323 = vsyncadd [#allocation6], 4294966272  ;;  %v330_v0 = vmov 0.0   ;;  %v43_v1 = vld [vmem:[#allocation5 + $0x8] sm:$0xff]  ;;  %v45_v3 = vld [vmem:[#allocation5 + $0x18] sm:$0xff]  ;;  %vm72_vm0 = vcmask 130048   ;;  %v52_v14 = vlaneseq }
  0x27   :  { %140 = vmatprep.mubr.f32.mxu0 %v330_v0  ;;  %211 = vmatprep.mubr.f32.mxu1 %v330_v0  ;;  %v47_v2 = vld [vmem:[#allocation5 + $0x28] sm:$0xff]  ;;  %v49_v5 = vld [vmem:[#allocation5 + $0x38] sm:$0xff]  ;;  %v42_v6 = vld [vmem:[#allocation5] sm:$0xff]  ;;  %s331_s11 = smov [#allocation7]  }
  0x28   :  { %v240_v4 = vpack.c.bf16 %v47_v2, %v43_v1  ;;  %v46_v7 = vld [vmem:[#allocation5 + $0x20] sm:$0xff]  ;;  %v244_v8 = vpack.c.bf16 %v49_v5, %v45_v3  ;;  %v44_v10 = vld [vmem:[#allocation5 + $0x10] sm:$0xff]  ;;  %v41_v13 = vld [vmem:[#allocation2] sm:$0xff]  ;;  %v53_v15 = vshrl.u32 %v52_v14, 7  ;;  %s228_s12 = sshll.u32 %s331_s11, 4  ;;  %s229_s12 = int_to_ptr.vmem [resolvable:$true] %s228_s12 }
  0x29   :  { %v242_v9 = vpack.c.bf16 %v46_v7, %v42_v6  ;;  %v48_v11 = vld [vmem:[#allocation5 + $0x30] sm:$0xff]  ;;  %v50_v17 = vld [vmem:[%s400_s2] sm:$0xf]  ;;  %s298_s2 = scalar_lea.vmem %s229_s12, 512  ;;  %p303_p3 = scmp.lt.s32.totalorder %s229_s12, %s229_s12 }
  0x2a   :  { %241 = vmatprep.subr.bf16.mxu0 %v240_v4  ;;  %v246_v12 = vpack.c.bf16 %v48_v11, %v44_v10  ;;  %245 = vmatprep.subr.bf16.mxu1 %v244_v8  ;;  %v54_v16 = vsub.s32 0, %v53_v15  ;;  %v62_v18 = vsub.s32 2, %v53_v15  ;;  %v58_v19 = vsub.s32 1, %v53_v15  ;;  %p299_p2 = scmp.ne.s32.totalorder %s229_s12, %s298_s2  ;;  %p304_p4 = scmp.lt.s32.totalorder %s298_s2, %s298_s2 }
  0x2b   :  { %243 = vmatpush1.bf16.msra.mxu0 %v242_v9  ;;  %v66_v20 = vsub.s32 3, %v53_v15 }
  0x2c   :  { %247 = vmatpush1.bf16.msra.mxu1 %v246_v12  ;;  %v55_v21 = vrot.slane %v50_v17, %v54_v16  ;;  %v63_v22 = vrot.slane %v50_v17, %v62_v18  ;;  %v59_v23 = vrot.slane %v50_v17, %v58_v19  ;;  %p305_p5 = por %p304_p4, %p303_p3 }
  0x2d   :  { %v67_v24 = vrot.slane %v50_v17, %v66_v20 }
  0x2e   :  { %238 = vmatmul.mubr.msk.f32.vlgmr.msra.gmra.mrb[0].mxu0 %vm72_vm0, %v41_v13  ;;  %p306_p6 = pnand %p305_p5, %p299_p2 }
  0x2f   :  { %239 = vmatmul.mubr.msk.f32.vlgmr.msra.gmra.mrb[0].mxu1 %vm72_vm0, %v41_v13 }
 0x101   :  { %v142_v25 = vpop.f32.mrb[0].mxu0 }
 0x102   :  { %v143_v26 = vadd.f32 %v142_v25, %v55_v21  ;;  %v213_v27 = vpop.f32.mrb[0].mxu1  ;;  %v144_v28 = vpop.f32.mrb[1].mxu0 }
 0x103   :  { %v214_v29 = vadd.f32 %v213_v27, %v63_v22  ;;  %v145_v30 = vadd.f32 %v144_v28, %v59_v23  ;;  %v215_v31 = vpop.f32.mrb[1].mxu1 }
 0x104   :  { %218 = vst [vmem:[#allocation7] sm:$0xff] %v143_v26  ;;  %v216_v32 = vadd.f32 %v215_v31, %v67_v24 }
 0x105   :  { %220 = vst [vmem:[#allocation7 + $0x10] sm:$0xff] %v214_v29  ;;  %219 = vst [vmem:[#allocation7 + $0x8] sm:$0xff] %v145_v30 }
 0x106   :  { %221 = vst [vmem:[#allocation7 + $0x18] sm:$0xff] %v216_v32 }
 0x107   :  { %309 = shalt.err (!%p306_p6)
}
 0x108   :  { %s310_s15 = scalar_lea.hbm %s401_s3, 512 }
 0x109   :  { %p311_p7 = scmp.ne.s32.totalorder %s401_s3, %s310_s15  ;;  %p314_p8 = scmp.lt.u32.totalorder %s310_s15, %s401_s3 }
 0x10b   :  { %p316_p9 = pnand %p314_p8, %p311_p7 }
 0x10d   :  { %319 = shalt.err (!%p316_p9)
}
 0x10e   :  { %231 = dma.vmem_to_hbm [thread:$0]  %s229_s12, 512, %s401_s3, [#allocation4]  }
 0x10f   :  { %324 = dma.done.wait [#allocation4], 512  }
 0x110   :  { %325 = vsyncadd [#allocation4], 4294966784 }
 0x111   :  { %235 = vsyncpa [#allocation3], 1 }
 0x112   :  { %236 = vsyncpa [#allocation6], 1 }
 0x113   :  { %237 = vsyncpa [#allocation4], 1 }

</bundles_post_ra>
